<compile_context>
chip_gen: v7x
topology: tpu7x:2x2x1
jax: 0.10.0
libtpu: 0.0.40
codegen_flags: <defaults>
</compile_context>

<pallas_src>
import functools

import jax
import jax.numpy as jnp
from jax.experimental import pallas as pl
from jax.experimental.pallas import tpu as pltpu

_LANE = 128
_VMEM_LIMIT = 48 * 1024 * 1024   # leave headroom on v7x (64 MiB physical)


# ---------------------------------------------------------------------------
# Pallas kernels
# ---------------------------------------------------------------------------

def _conv_bias_relu_kernel(p_ref, w_ref, b_ref, o_ref):
    """out = relu(patches @ w_folded + bias)   -- conv1 + bn1 + relu."""
    acc = jnp.dot(p_ref[...], w_ref[...], preferred_element_type=jnp.float32)
    o_ref[...] = jnp.maximum(acc + b_ref[...], 0.0).astype(o_ref.dtype)


def _residual_identity_kernel(p_ref, w_ref, b_ref, xs_ref, *out_refs,
                              with_preact):
    """pre = (patches @ w_folded + bias) + x;  out = relu(pre)."""
    main = jnp.dot(p_ref[...], w_ref[...],
                   preferred_element_type=jnp.float32) + b_ref[...]
    pre = main + xs_ref[...].astype(jnp.float32)
    out = jnp.maximum(pre, 0.0)
    if with_preact:
        out_refs[0][...] = pre.astype(out_refs[0].dtype)   # f32 preact
        out_refs[1][...] = out.astype(out_refs[1].dtype)   # bf16 out
    else:
        out_refs[0][...] = out.astype(out_refs[0].dtype)


def _residual_downsample_kernel(p_ref, w_ref, b_ref,
                                ps_ref, ws_ref, bs_ref, *out_refs,
                                with_preact):
    """pre = bn2(conv2) + bn_s(conv1x1(x));  out = relu(pre)."""
    main = jnp.dot(p_ref[...], w_ref[...],
                   preferred_element_type=jnp.float32) + b_ref[...]
    shortcut = jnp.dot(ps_ref[...], ws_ref[...],
                       preferred_element_type=jnp.float32) + bs_ref[...]
    pre = main + shortcut
    out = jnp.maximum(pre, 0.0)
    if with_preact:
        out_refs[0][...] = pre.astype(out_refs[0].dtype)
        out_refs[1][...] = out.astype(out_refs[1].dtype)
    else:
        out_refs[0][...] = out.astype(out_refs[0].dtype)


# ---------------------------------------------------------------------------
# Pallas wrappers
# ---------------------------------------------------------------------------

def _round_up(x, m):
    return ((x + m - 1) // m) * m


def _pad_to(x, rows, cols):
    r, c = x.shape
    return jnp.pad(x, ((0, rows - r), (0, cols - c)))


def _compiler_params():
    return pltpu.CompilerParams(
        dimension_semantics=("parallel",),
        vmem_limit_bytes=_VMEM_LIMIT)


def matmul_bias_relu(patches, w, bias, *, tm=512, out_dtype=jnp.bfloat16):
    """conv1 + folded-bn1 + relu; resident weight, single M-tile grid axis."""
    m, k = patches.shape
    cout = w.shape[1]
    kp = _round_up(k, _LANE)            # pad contraction to a lane multiple
    np_ = _round_up(cout, _LANE)        # lane-dense output
    tm = min(tm, _round_up(m, 16))      # bf16 sublane packing (16-aligned)
    mp = _round_up(m, tm)

    patches_p = _pad_to(patches.astype(jnp.bfloat16), mp, kp)
    w_p = _pad_to(w.astype(jnp.bfloat16), kp, np_)
    b_p = _pad_to(bias.astype(jnp.float32), 1, np_)

    out = pl.pallas_call(
        _conv_bias_relu_kernel,
        out_shape=jax.ShapeDtypeStruct((mp, np_), out_dtype),
        grid=(mp // tm,),
        in_specs=[
            pl.BlockSpec((tm, kp), lambda i: (i, 0)),
            pl.BlockSpec((kp, np_), lambda i: (0, 0)),   # VMEM-resident weight
            pl.BlockSpec((1, np_), lambda i: (0, 0)),
        ],
        out_specs=pl.BlockSpec((tm, np_), lambda i: (i, 0)),
        compiler_params=_compiler_params(),
    )(patches_p, w_p, b_p)
    return out[:m, :cout]


def matmul_residual_relu(patches, w, bias, xs, ws=None, bs=None, *,
                         with_preact, tm=512):
    """conv2 + folded-bn2 + shortcut + residual add + relu.

    ws is None  -> identity shortcut: xs is the (m, cout) input activation
                   (bf16), added directly in the kernel.
    ws not None -> downsample shortcut: xs are 1x1-conv "patches" (m, cin),
                   ws/bs the folded 1x1 weight/bias.
    """
    m, k = patches.shape
    cout = w.shape[1]
    kp = _round_up(k, _LANE)
    np_ = _round_up(cout, _LANE)
    tm = min(tm, _round_up(m, 16))
    mp = _round_up(m, tm)

    patches_p = _pad_to(patches.astype(jnp.bfloat16), mp, kp)
    w_p = _pad_to(w.astype(jnp.bfloat16), kp, np_)
    b_p = _pad_to(bias.astype(jnp.float32), 1, np_)

    in_specs = [
        pl.BlockSpec((tm, kp), lambda i: (i, 0)),
        pl.BlockSpec((kp, np_), lambda i: (0, 0)),
        pl.BlockSpec((1, np_), lambda i: (0, 0)),
    ]

    if ws is None:
        # Identity shortcut: bf16 residual read, f32 add in-kernel.
        xs_p = _pad_to(xs.astype(jnp.bfloat16), mp, np_)
        kernel = functools.partial(_residual_identity_kernel,
                                   with_preact=with_preact)
        in_specs.append(pl.BlockSpec((tm, np_), lambda i: (i, 0)))
        operands = (patches_p, w_p, b_p, xs_p)
    else:
        ks = xs.shape[1]
        ksp = _round_up(ks, _LANE)
        xs_p = _pad_to(xs.astype(jnp.bfloat16), mp, ksp)
        ws_p = _pad_to(ws.astype(jnp.bfloat16), ksp, np_)
        bs_p = _pad_to(bs.astype(jnp.float32), 1, np_)
        kernel = functools.partial(_residual_downsample_kernel,
                                   with_preact=with_preact)
        in_specs += [
            pl.BlockSpec((tm, ksp), lambda i: (i, 0)),
            pl.BlockSpec((ksp, np_), lambda i: (0, 0)),
            pl.BlockSpec((1, np_), lambda i: (0, 0)),
        ]
        operands = (patches_p, w_p, b_p, xs_p, ws_p, bs_p)

    out_block = pl.BlockSpec((tm, np_), lambda i: (i, 0))
    if with_preact:
        out_shape = (jax.ShapeDtypeStruct((mp, np_), jnp.float32),   # preact
                     jax.ShapeDtypeStruct((mp, np_), jnp.bfloat16))  # relu out
        out_specs = (out_block, out_block)
    else:
        out_shape = jax.ShapeDtypeStruct((mp, np_), jnp.bfloat16)
        out_specs = out_block

    res = pl.pallas_call(
        kernel,
        out_shape=out_shape,
        grid=(mp // tm,),
        in_specs=in_specs,
        out_specs=out_specs,
        compiler_params=_compiler_params(),
    )(*operands)

    if with_preact:
        preact, out = res
        return preact[:m, :cout], out[:m, :cout]
    return res[:m, :cout]


# ---------------------------------------------------------------------------
# Glue: im2col, weight / BN folding, BasicBlock forward
# ---------------------------------------------------------------------------

def im2col(x_nhwc, ksize, stride, pad):
    """Extract conv patches in the input dtype (bf16); (N*Ho*Wo, k*k*C)."""
    n, h, w, c = x_nhwc.shape
    xp = jnp.pad(x_nhwc, ((0, 0), (pad, pad), (pad, pad), (0, 0)))
    ho = (h + 2 * pad - ksize) // stride + 1
    wo = (w + 2 * pad - ksize) // stride + 1
    cols = []
    for kh in range(ksize):
        for kw in range(ksize):
            cols.append(xp[:, kh:kh + ho * stride:stride,
                           kw:kw + wo * stride:stride, :])
    patches = jnp.concatenate(cols, axis=-1)  # (N, Ho, Wo, k*k*C)
    return patches.reshape(n * ho * wo, ksize * ksize * c), ho, wo


def conv_weight_to_matmul(w_oihw):
    """(Cout, Cin, KH, KW) -> (KH*KW*Cin, Cout), matching im2col ordering."""
    cout, cin, kh, kw = w_oihw.shape
    return jnp.transpose(w_oihw, (2, 3, 1, 0)).reshape(kh * kw * cin, cout)


def bn_fold_into_weight(w_mat, gamma, beta, mean, var, eps=1e-5):
    """Fold eval-mode BN into (K, Cout) matmul weight; return weight, bias."""
    scale = gamma / jnp.sqrt(var + eps)
    bias = beta - mean * scale
    w_folded = (w_mat * scale[None, :]).astype(jnp.float32)
    return w_folded, bias.reshape(1, -1).astype(jnp.float32)


def init_basic_block_params(key, in_planes, planes, stride):
    ks = jax.random.split(key, 8)
    p = {
        "conv1_w": 0.1 * jax.random.normal(ks[0], (planes, in_planes, 3, 3), jnp.float32),
        "bn1": (jax.random.uniform(ks[1], (planes,), minval=0.5, maxval=1.5),
                0.1 * jax.random.normal(ks[2], (planes,)),
                jnp.zeros((planes,)), jnp.ones((planes,))),
        "conv2_w": 0.1 * jax.random.normal(ks[3], (planes, planes, 3, 3), jnp.float32),
        "bn2": (jax.random.uniform(ks[4], (planes,), minval=0.5, maxval=1.5),
                0.1 * jax.random.normal(ks[5], (planes,)),
                jnp.zeros((planes,)), jnp.ones((planes,))),
    }
    if stride != 1 or in_planes != planes:
        p["sc_w"] = 0.1 * jax.random.normal(ks[6], (planes, in_planes, 1, 1), jnp.float32)
        p["sc_bn"] = (jax.random.uniform(ks[7], (planes,), minval=0.5, maxval=1.5),
                      jnp.zeros((planes,)), jnp.zeros((planes,)), jnp.ones((planes,)))
    return p


@functools.partial(jax.jit, static_argnames=("stride", "is_last"))
def basic_block_forward_nhwc(x_nhwc, params, *, stride, is_last):
    """BasicBlock forward on NHWC activations (bf16 chain-friendly)."""
    n, h, w, cin = x_nhwc.shape
    x_nhwc = x_nhwc.astype(jnp.bfloat16)   # single cast; im2col stays bf16

    # ---- conv1 (3x3, stride) + folded bn1 + relu (bf16 intermediate) ----
    w1 = conv_weight_to_matmul(params["conv1_w"])
    w1, b1 = bn_fold_into_weight(w1, *params["bn1"])
    planes = w1.shape[1]
    p1, ho, wo = im2col(x_nhwc, 3, stride, 1)
    y1 = matmul_bias_relu(p1, w1, b1)                   # (N*Ho*Wo, planes) bf16
    y1_nhwc = y1.reshape(n, ho, wo, planes)

    # ---- conv2 (3x3, 1) + folded bn2 + shortcut + residual add + relu ----
    w2 = conv_weight_to_matmul(params["conv2_w"])
    w2, b2 = bn_fold_into_weight(w2, *params["bn2"])
    p2, _, _ = im2col(y1_nhwc, 3, 1, 1)                 # bf16

    if "sc_w" in params:
        ws = conv_weight_to_matmul(params["sc_w"])      # (Cin, planes)
        ws, bs = bn_fold_into_weight(ws, *params["sc_bn"])
        xs = x_nhwc[:, ::stride, ::stride, :].reshape(n * ho * wo, cin)
        res = matmul_residual_relu(p2, w2, b2, xs, ws, bs, with_preact=is_last)
    else:
        xs = x_nhwc.reshape(n * ho * wo, cin)           # identity add in-kernel
        res = matmul_residual_relu(p2, w2, b2, xs, with_preact=is_last)

    if is_last:
        preact, out = res
        return (out.reshape(n, ho, wo, planes),
                preact.reshape(n, ho, wo, planes))
    return res.reshape(n, ho, wo, planes)


def basic_block_forward(x_nchw, params, *, stride, is_last):
    """PyTorch-interface entry point (NCHW in/out, f32).  For chains of
    blocks prefer basic_block_forward_nhwc and transpose only once."""
    x_nhwc = jnp.transpose(x_nchw, (0, 2, 3, 1))
    res = basic_block_forward_nhwc(x_nhwc, params, stride=stride, is_last=is_last)
    to_nchw = lambda t: jnp.transpose(t, (0, 3, 1, 2)).astype(jnp.float32)
    if is_last:
        out, preact = res
        return to_nchw(out), to_nchw(preact)
    return to_nchw(res)


# ---------------------------------------------------------------------------
# Pure-JAX reference (for a loose bf16-tolerant correctness check)
# ---------------------------------------------------------------------------

def _ref_basic_block(x_nchw, params, stride, is_last):
    def conv(x, w, s, pad):
        return jax.lax.conv_general_dilated(
            x, w, window_strides=(s, s), padding=pad,
            dimension_numbers=("NCHW", "OIHW", "NCHW"))

    def bn(x, gamma, beta, mean, var, eps=1e-5):
        s = gamma / jnp.sqrt(var + eps)
        b = beta - mean * s
        return x * s[None, :, None, None] + b[None, :, None, None]

    out = jax.nn.relu(bn(conv(x_nchw, params["conv1_w"], stride, ((1, 1), (1, 1))),
                         *params["bn1"]))
    out = bn(conv(out, params["conv2_w"], 1, ((1, 1), (1, 1))), *params["bn2"])
    if "sc_w" in params:
        sc = bn(conv(x_nchw, params["sc_w"], stride, "VALID"), *params["sc_bn"])
    else:
        sc = x_nchw
    pre = out + sc
    out = jax.nn.relu(pre)
    return (out, pre) if is_last else out


# ---------------------------------------------------------------------------
# Main
# ---------------------------------------------------------------------------

if __name__ == "__main__":
    key = jax.random.PRNGKey(0)
    k_x, k_p1, k_p2 = jax.random.split(key, 3)

    # Block 1: downsample shortcut (stride 2, channel change), is_last=True.
    # Block 2: identity shortcut (stride 1, same channels), is_last=False.
    N, IN_PLANES, PLANES, H, W, STRIDE = 2, 4, 8, 16, 16, 2
    x = jax.random.normal(k_x, (N, IN_PLANES, H, W), jnp.float32)
    params = init_basic_block_params(k_p1, IN_PLANES, PLANES, STRIDE)
    params_id = init_basic_block_params(k_p2, PLANES, PLANES, 1)

    # Network boundary: one NCHW->NHWC transpose, chain blocks in NHWC/bf16.
    x_nhwc = jnp.transpose(x, (0, 2, 3, 1))
    out1_nhwc, pre1_nhwc = basic_block_forward_nhwc(
        x_nhwc, params, stride=STRIDE, is_last=True)
    out2_nhwc = basic_block_forward_nhwc(
        out1_nhwc, params_id, stride=1, is_last=False)
    jax.block_until_ready((out1_nhwc, pre1_nhwc, out2_nhwc))

    # Back to NCHW / f32 only at the boundary (PyTorch-facing layout).
    to_nchw = lambda t: jnp.transpose(t, (0, 3, 1, 2)).astype(jnp.float32)
    out1, pre1, out2 = to_nchw(out1_nhwc), to_nchw(pre1_nhwc), to_nchw(out2_nhwc)

    assert out1.shape == (N, PLANES, H // STRIDE, W // STRIDE)
    assert pre1.shape == (N, PLANES, H // STRIDE, W // STRIDE)
    assert out2.shape == (N, PLANES, H // STRIDE, W // STRIDE)

    ref_out1, ref_pre1 = _ref_basic_block(x, params, STRIDE, True)
    ref_out2 = _ref_basic_block(out1, params_id, 1, False)
    assert jnp.allclose(out1, ref_out1, atol=5e-2, rtol=5e-2)
    assert jnp.allclose(pre1, ref_pre1, atol=5e-2, rtol=5e-2)
    assert jnp.allclose(out2, ref_out2, atol=5e-2, rtol=5e-2)

    print("KERNEL_OK")
</pallas_src>

<mosaic_0001>
module attributes {stable_mosaic.version = 11 : i64} {
  func.func @_conv_bias_relu_kernel(%arg0: i32, %arg1: memref<128x128xbf16, #tpu.memory_space<vmem>>, %arg2: memref<128x128xbf16, #tpu.memory_space<vmem>>, %arg3: memref<1x128xf32, #tpu.memory_space<vmem>>, %arg4: memref<128x128xbf16, #tpu.memory_space<vmem>>) attributes {dimension_semantics = [#tpu.dimension_semantics<parallel>], iteration_bounds = array<i64: 1>, scalar_prefetch = 0 : i64, scratch_operands = 0 : i64, tpu.core_type = #tpu.core_type<tc>, window_params = [{transform_indices = @transform_0, window_bounds = array<i64: 128, 128>}, {pipeline_mode = #tpu.pipeline_mode<synchronous>, transform_indices = @transform_1, window_bounds = array<i64: 128, 128>}, {pipeline_mode = #tpu.pipeline_mode<synchronous>, transform_indices = @transform_2, window_bounds = array<i64: 1, 128>}, {transform_indices = @transform_3, window_bounds = array<i64: 128, 128>}]} {
    %c0 = arith.constant 0 : index
    %c0_0 = arith.constant 0 : index
    %0 = vector.load %arg1[%c0, %c0_0] : memref<128x128xbf16, #tpu.memory_space<vmem>>, vector<128x128xbf16>
    %c0_1 = arith.constant 0 : index
    %c0_2 = arith.constant 0 : index
    %1 = vector.load %arg2[%c0_1, %c0_2] : memref<128x128xbf16, #tpu.memory_space<vmem>>, vector<128x128xbf16>
    %cst = arith.constant dense<0.000000e+00> : vector<128x128xf32>
    %2 = tpu.matmul %0, %1, %cst {dimension_numbers = #tpu.dot_dimension_numbers<[1], [0], [0], [1], [0, 0, 1, 1], [], []>} : vector<128x128xbf16>, vector<128x128xbf16>, vector<128x128xf32> -> vector<128x128xf32>
    %c0_3 = arith.constant 0 : index
    %c0_4 = arith.constant 0 : index
    %3 = vector.load %arg3[%c0_3, %c0_4] : memref<1x128xf32, #tpu.memory_space<vmem>>, vector<1x128xf32>
    %4 = vector.broadcast %3 : vector<1x128xf32> to vector<128x128xf32>
    %5 = arith.addf %2, %4 : vector<128x128xf32>
    %cst_5 = arith.constant 0.000000e+00 : f32
    %6 = vector.broadcast %cst_5 : f32 to vector<128x128xf32>
    %7 = arith.maximumf %5, %6 : vector<128x128xf32>
    %8 = arith.truncf %7 : vector<128x128xf32> to vector<128x128xbf16>
    %c0_6 = arith.constant 0 : index
    %c0_7 = arith.constant 0 : index
    %9 = vector.load %arg4[%c0_6, %c0_7] : memref<128x128xbf16, #tpu.memory_space<vmem>>, vector<128x128xbf16>
    tpu.vector_store %arg4[%c0_6, %c0_7], %8 {strides = array<i32>} : memref<128x128xbf16, #tpu.memory_space<vmem>>, vector<128x128xbf16>,
    return
  }
  func.func @transform_0(%arg0: i32) -> (i32, i32) {
    %c0_i32 = arith.constant 0 : i32
    %c0_i32_0 = arith.constant 0 : i32
    return %arg0, %c0_i32 : i32, i32
  }
  func.func @transform_1(%arg0: i32) -> (i32, i32) {
    %c0_i32 = arith.constant 0 : i32
    %c0_i32_0 = arith.constant 0 : i32
    %c0_i32_1 = arith.constant 0 : i32
    return %c0_i32, %c0_i32_0 : i32, i32
  }
  func.func @transform_2(%arg0: i32) -> (i32, i32) {
    %c0_i32 = arith.constant 0 : i32
    %c0_i32_0 = arith.constant 0 : i32
    %c0_i32_1 = arith.constant 0 : i32
    return %c0_i32, %c0_i32_0 : i32, i32
  }
  func.func @transform_3(%arg0: i32) -> (i32, i32) {
    %c0_i32 = arith.constant 0 : i32
    %c0_i32_0 = arith.constant 0 : i32
    return %arg0, %c0_i32 : i32, i32
  }
}

module attributes {stable_mosaic.version = 11 : i64} {
  func.func @_residual_downsample_kernel(%arg0: i32, %arg1: memref<128x128xbf16, #tpu.memory_space<vmem>>, %arg2: memref<128x128xbf16, #tpu.memory_space<vmem>>, %arg3: memref<1x128xf32, #tpu.memory_space<vmem>>, %arg4: memref<128x128xbf16, #tpu.memory_space<vmem>>, %arg5: memref<128x128xbf16, #tpu.memory_space<vmem>>, %arg6: memref<1x128xf32, #tpu.memory_space<vmem>>, %arg7: memref<128x128xf32, #tpu.memory_space<vmem>>, %arg8: memref<128x128xbf16, #tpu.memory_space<vmem>>) attributes {dimension_semantics = [#tpu.dimension_semantics<parallel>], iteration_bounds = array<i64: 1>, scalar_prefetch = 0 : i64, scratch_operands = 0 : i64, tpu.core_type = #tpu.core_type<tc>, window_params = [{transform_indices = @transform_0, window_bounds = array<i64: 128, 128>}, {pipeline_mode = #tpu.pipeline_mode<synchronous>, transform_indices = @transform_1, window_bounds = array<i64: 128, 128>}, {pipeline_mode = #tpu.pipeline_mode<synchronous>, transform_indices = @transform_2, window_bounds = array<i64: 1, 128>}, {transform_indices = @transform_3, window_bounds = array<i64: 128, 128>}, {pipeline_mode = #tpu.pipeline_mode<synchronous>, transform_indices = @transform_4, window_bounds = array<i64: 128, 128>}, {pipeline_mode = #tpu.pipeline_mode<synchronous>, transform_indices = @transform_5, window_bounds = array<i64: 1, 128>}, {transform_indices = @transform_6, window_bounds = array<i64: 128, 128>}, {transform_indices = @transform_7, window_bounds = array<i64: 128, 128>}]} {
    %c0 = arith.constant 0 : index
    %c0_0 = arith.constant 0 : index
    %0 = vector.load %arg1[%c0, %c0_0] : memref<128x128xbf16, #tpu.memory_space<vmem>>, vector<128x128xbf16>
    %c0_1 = arith.constant 0 : index
    %c0_2 = arith.constant 0 : index
    %1 = vector.load %arg2[%c0_1, %c0_2] : memref<128x128xbf16, #tpu.memory_space<vmem>>, vector<128x128xbf16>
    %cst = arith.constant dense<0.000000e+00> : vector<128x128xf32>
    %2 = tpu.matmul %0, %1, %cst {dimension_numbers = #tpu.dot_dimension_numbers<[1], [0], [0], [1], [0, 0, 1, 1], [], []>} : vector<128x128xbf16>, vector<128x128xbf16>, vector<128x128xf32> -> vector<128x128xf32>
    %c0_3 = arith.constant 0 : index
    %c0_4 = arith.constant 0 : index
    %3 = vector.load %arg3[%c0_3, %c0_4] : memref<1x128xf32, #tpu.memory_space<vmem>>, vector<1x128xf32>
    %4 = vector.broadcast %3 : vector<1x128xf32> to vector<128x128xf32>
    %5 = arith.addf %2, %4 : vector<128x128xf32>
    %c0_5 = arith.constant 0 : index
    %c0_6 = arith.constant 0 : index
    %6 = vector.load %arg4[%c0_5, %c0_6] : memref<128x128xbf16, #tpu.memory_space<vmem>>, vector<128x128xbf16>
    %c0_7 = arith.constant 0 : index
    %c0_8 = arith.constant 0 : index
    %7 = vector.load %arg5[%c0_7, %c0_8] : memref<128x128xbf16, #tpu.memory_space<vmem>>, vector<128x128xbf16>
    %cst_9 = arith.constant dense<0.000000e+00> : vector<128x128xf32>
    %8 = tpu.matmul %6, %7, %cst_9 {dimension_numbers = #tpu.dot_dimension_numbers<[1], [0], [0], [1], [0, 0, 1, 1], [], []>} : vector<128x128xbf16>, vector<128x128xbf16>, vector<128x128xf32> -> vector<128x128xf32>
    %c0_10 = arith.constant 0 : index
    %c0_11 = arith.constant 0 : index
    %9 = vector.load %arg6[%c0_10, %c0_11] : memref<1x128xf32, #tpu.memory_space<vmem>>, vector<1x128xf32>
    %10 = vector.broadcast %9 : vector<1x128xf32> to vector<128x128xf32>
    %11 = arith.addf %8, %10 : vector<128x128xf32>
    %12 = arith.addf %5, %11 : vector<128x128xf32>
    %cst_12 = arith.constant 0.000000e+00 : f32
    %13 = vector.broadcast %cst_12 : f32 to vector<128x128xf32>
    %14 = arith.maximumf %12, %13 : vector<128x128xf32>
    %c0_13 = arith.constant 0 : index
    %c0_14 = arith.constant 0 : index
    %15 = vector.load %arg7[%c0_13, %c0_14] : memref<128x128xf32, #tpu.memory_space<vmem>>, vector<128x128xf32>
    tpu.vector_store %arg7[%c0_13, %c0_14], %12 {strides = array<i32>} : memref<128x128xf32, #tpu.memory_space<vmem>>, vector<128x128xf32>,
    %16 = arith.truncf %14 : vector<128x128xf32> to vector<128x128xbf16>
    %c0_15 = arith.constant 0 : index
    %c0_16 = arith.constant 0 : index
    %17 = vector.load %arg8[%c0_15, %c0_16] : memref<128x128xbf16, #tpu.memory_space<vmem>>, vector<128x128xbf16>
    tpu.vector_store %arg8[%c0_15, %c0_16], %16 {strides = array<i32>} : memref<128x128xbf16, #tpu.memory_space<vmem>>, vector<128x128xbf16>,
    return
  }
  func.func @transform_0(%arg0: i32) -> (i32, i32) {
    %c0_i32 = arith.constant 0 : i32
    %c0_i32_0 = arith.constant 0 : i32
    return %arg0, %c0_i32 : i32, i32
  }
  func.func @transform_1(%arg0: i32) -> (i32, i32) {
    %c0_i32 = arith.constant 0 : i32
    %c0_i32_0 = arith.constant 0 : i32
    %c0_i32_1 = arith.constant 0 : i32
    return %c0_i32, %c0_i32_0 : i32, i32
  }
  func.func @transform_2(%arg0: i32) -> (i32, i32) {
    %c0_i32 = arith.constant 0 : i32
    %c0_i32_0 = arith.constant 0 : i32
    %c0_i32_1 = arith.constant 0 : i32
    return %c0_i32, %c0_i32_0 : i32, i32
  }
  func.func @transform_3(%arg0: i32) -> (i32, i32) {
    %c0_i32 = arith.constant 0 : i32
    %c0_i32_0 = arith.constant 0 : i32
    return %arg0, %c0_i32 : i32, i32
  }
  func.func @transform_4(%arg0: i32) -> (i32, i32) {
    %c0_i32 = arith.constant 0 : i32
    %c0_i32_0 = arith.constant 0 : i32
    %c0_i32_1 = arith.constant 0 : i32
    return %c0_i32, %c0_i32_0 : i32, i32
  }
  func.func @transform_5(%arg0: i32) -> (i32, i32) {
    %c0_i32 = arith.constant 0 : i32
    %c0_i32_0 = arith.constant 0 : i32
    %c0_i32_1 = arith.constant 0 : i32
    return %c0_i32, %c0_i32_0 : i32, i32
  }
  func.func @transform_6(%arg0: i32) -> (i32, i32) {
    %c0_i32 = arith.constant 0 : i32
    %c0_i32_0 = arith.constant 0 : i32
    return %arg0, %c0_i32 : i32, i32
  }
  func.func @transform_7(%arg0: i32) -> (i32, i32) {
    %c0_i32 = arith.constant 0 : i32
    %c0_i32_0 = arith.constant 0 : i32
    return %arg0, %c0_i32 : i32, i32
  }
}

</mosaic_0001>

<bundles_post_ra>
// kernel: basic_block_forward_nhwc.2
= control target key start
LH: loop header
LB: loop body
LE: loop exit
PB: predicated region body
PF: predicated region fallthrough
CT: control target
= control target key end

     0   :  { %s618_s1 = inlined_call_operand.vmem [shape: bf16[128,128], index: 1, kind: input, shape index: {}]   ;;  %s619_s0 = inlined_call_operand.vmem [shape: bf16[128,128], index: 0, kind: input, shape index: {}]   ;;  %s620_s2 = inlined_call_operand.vmem [shape: f32[1,128], index: 2, kind: input, shape index: {}]   ;;  %s621_s3 = inlined_call_operand.vmem [shape: bf16[128,128], index: 3, kind: output, shape index: {}]  }
   0x1   :  { %v507_v0 = vld [vmem:[%s618_s1] sm:$0xff]   ;;  %v508_v1 = vld [vmem:[%s618_s1 + $0x8] sm:$0xff]   ;;  %v509_v2 = vld [vmem:[%s618_s1 + $0x10] sm:$0xff]  }
   0x2   :  { %459 = vmatprep.subr.bf16.mxu0 %v507_v0  ;;  %491 = vmatprep.subr.bf16.mxu1 %v507_v0  ;;  %v510_v3 = vld [vmem:[%s618_s1 + $0x18] sm:$0xff]   ;;  %v515_v4 = vld [vmem:[%s619_s0] sm:$0xff]   ;;  %v512_v7 = vld [vmem:[%s618_s1 + $0x28] sm:$0xff]  }
   0x3   :  { %460 = vmatpush3.bf16.msra.mxu0 %v507_v0  ;;  %499 = vmatpush3.bf16.msra.mxu1 %v507_v0  ;;  %v516_v5 = vld [vmem:[%s619_s0 + $0x20] sm:$0xff]   ;;  %v513_v8 = vld [vmem:[%s618_s1 + $0x30] sm:$0xff]   ;;  %v514_v9 = vld [vmem:[%s618_s1 + $0x38] sm:$0xff]  }
   0x4   :  { %461 = vmatprep.subr.bf16.mxu0 %v508_v1  ;;  %492 = vmatprep.subr.bf16.mxu1 %v508_v1  ;;  %v511_v6 = vld [vmem:[%s618_s1 + $0x20] sm:$0xff]   ;;  %v517_v10 = vld [vmem:[%s619_s0 + $0x8] sm:$0xff]   ;;  %v519_v12 = vld [vmem:[%s619_s0 + $0x10] sm:$0xff]  }
   0x5   :  { %475 = vmatprep.mubr.bf16.mxu0 %v515_v4  ;;  %483 = vmatprep.mubr.bf16.mxu1 %v516_v5  ;;  %v518_v11 = vld [vmem:[%s619_s0 + $0x28] sm:$0xff]   ;;  %v520_v13 = vld [vmem:[%s619_s0 + $0x30] sm:$0xff]   ;;  %v521_v14 = vld [vmem:[%s619_s0 + $0x18] sm:$0xff]  }
   0x6   :  { %v522_v15 = vld [vmem:[%s619_s0 + $0x38] sm:$0xff]   ;;  %v347_v16 = vld [vmem:[%s620_s2] ss:$0 sm:$0xff] }
   0x7   :  { %462 = vmatpush3.bf16.msra.mxu0 %v508_v1  ;;  %500 = vmatpush3.bf16.msra.mxu1 %v508_v1 }
   0x8   :  { %463 = vmatprep.subr.bf16.mxu0 %v509_v2  ;;  %493 = vmatprep.subr.bf16.mxu1 %v509_v2 }
   0xb   :  { %464 = vmatpush3.bf16.msra.mxu0 %v509_v2  ;;  %501 = vmatpush3.bf16.msra.mxu1 %v509_v2 }
   0xc   :  { %465 = vmatprep.subr.bf16.mxu0 %v510_v3  ;;  %494 = vmatprep.subr.bf16.mxu1 %v510_v3 }
   0xf   :  { %466 = vmatpush3.bf16.msra.mxu0 %v510_v3  ;;  %502 = vmatpush3.bf16.msra.mxu1 %v510_v3 }
  0x10   :  { %467 = vmatprep.subr.bf16.mxu0 %v511_v6  ;;  %495 = vmatprep.subr.bf16.mxu1 %v511_v6 }
  0x13   :  { %468 = vmatpush3.bf16.msra.mxu0 %v511_v6  ;;  %503 = vmatpush3.bf16.msra.mxu1 %v511_v6 }
  0x14   :  { %469 = vmatprep.subr.bf16.mxu0 %v512_v7  ;;  %496 = vmatprep.subr.bf16.mxu1 %v512_v7 }
  0x17   :  { %470 = vmatpush3.bf16.msra.mxu0 %v512_v7  ;;  %504 = vmatpush3.bf16.msra.mxu1 %v512_v7 }
  0x18   :  { %471 = vmatprep.subr.bf16.mxu0 %v513_v8  ;;  %497 = vmatprep.subr.bf16.mxu1 %v513_v8 }
  0x1b   :  { %472 = vmatpush3.bf16.msra.mxu0 %v513_v8  ;;  %505 = vmatpush3.bf16.msra.mxu1 %v513_v8 }
  0x1c   :  { %473 = vmatprep.subr.bf16.mxu0 %v514_v9  ;;  %498 = vmatprep.subr.bf16.mxu1 %v514_v9 }
  0x1f   :  { %474 = vmatpush3.bf16.msra.mxu0 %v514_v9  ;;  %506 = vmatpush3.bf16.msra.mxu1 %v514_v9 }
  0x22   :  { %476 = vmatmul.mubr.bf16.vlgmr.msra.gmra.mrb[0].mxu0 %v517_v10  ;;  %484 = vmatmul.mubr.bf16.vlgmr.msra.gmra.mrb[0].mxu1 %v518_v11 }
  0x23   :  { %479 = vmatprep.mubr.bf16.mxu0 %v519_v12  ;;  %487 = vmatprep.mubr.bf16.mxu1 %v520_v13 }
  0x2a   :  { %480 = vmatmul.mubr.bf16.gmra.mrb[4].mxu0 %v521_v14  ;;  %488 = vmatmul.mubr.bf16.gmra.mrb[4].mxu1 %v522_v15 }
  0xf5   :  { %v477_v17 = vpop.f32.mrb[0].mxu0  ;;  %v485_v18 = vpop.f32.mrb[0].mxu1 }
  0xf6   :  { %v193_v19 = vadd.f32 %v477_v17, %v347_v16  ;;  %v225_v20 = vadd.f32 %v485_v18, %v347_v16  ;;  %v184_v21 = vpop.f32.mrb[1].mxu0  ;;  %v216_v22 = vpop.f32.mrb[1].mxu1 }
  0xf7   :  { %v185_v23 = vadd.f32 %v347_v16, %v184_v21  ;;  %v217_v24 = vadd.f32 %v347_v16, %v216_v22  ;;  %v478_v25 = vpop.f32.mrb[2].mxu0  ;;  %v486_v26 = vpop.f32.mrb[2].mxu1 }
  0xf8   :  { %v196_v27 = vadd.f32 %v478_v25, %v347_v16  ;;  %v228_v28 = vadd.f32 %v486_v26, %v347_v16  ;;  %v187_v29 = vpop.f32.mrb[3].mxu0  ;;  %v219_v30 = vpop.f32.mrb[3].mxu1  ;;  %v249_v33 = vmax.f32 %v193_v19, 0.0  ;;  %v257_v34 = vmax.f32 %v225_v20, 0.0 }
  0xf9   :  { %v188_v31 = vadd.f32 %v347_v16, %v187_v29  ;;  %v220_v32 = vadd.f32 %v347_v16, %v219_v30  ;;  %v247_v37 = vmax.f32 %v185_v23, 0.0  ;;  %v255_v38 = vmax.f32 %v217_v24, 0.0 }
  0xfa   :  { %v250_v35 = vmax.f32 %v196_v27, 0.0  ;;  %v258_v36 = vmax.f32 %v228_v28, 0.0 }
  0xfb   :  { %v248_v39 = vmax.f32 %v188_v31, 0.0  ;;  %v256_v40 = vmax.f32 %v220_v32, 0.0 }
  0xfc   :  { %v404_v41 = vpack.c.bf16 %v250_v35, %v249_v33  ;;  %v424_v42 = vpack.c.bf16 %v258_v36, %v257_v34 }
  0xfd   :  { %v399_v43 = vpack.c.bf16 %v248_v39, %v247_v37  ;;  %v419_v44 = vpack.c.bf16 %v256_v40, %v255_v38  ;;  %v481_v45 = vpop.f32.mrb[4].mxu0  ;;  %v489_v46 = vpop.f32.mrb[4].mxu1 }
  0xfe   :  { %436 = vst [vmem:[%s621_s3 + $0x8] sm:$0xff] %v404_v41   ;;  %440 = vst [vmem:[%s621_s3 + $0x28] sm:$0xff] %v424_v42   ;;  %v209_v47 = vadd.f32 %v481_v45, %v347_v16  ;;  %v241_v48 = vadd.f32 %v489_v46, %v347_v16  ;;  %v200_v49 = vpop.f32.mrb[5].mxu0  ;;  %v232_v50 = vpop.f32.mrb[5].mxu1 }
  0xff   :  { %400 = vst [vmem:[%s621_s3] sm:$0xff] %v399_v43   ;;  %439 = vst [vmem:[%s621_s3 + $0x20] sm:$0xff] %v419_v44   ;;  %v201_v51 = vadd.f32 %v347_v16, %v200_v49  ;;  %v233_v52 = vadd.f32 %v347_v16, %v232_v50  ;;  %v482_v53 = vpop.f32.mrb[6].mxu0  ;;  %v490_v54 = vpop.f32.mrb[6].mxu1 }
 0x100   :  { %v212_v55 = vadd.f32 %v482_v53, %v347_v16  ;;  %v244_v56 = vadd.f32 %v490_v54, %v347_v16  ;;  %v203_v57 = vpop.f32.mrb[7].mxu0  ;;  %v235_v58 = vpop.f32.mrb[7].mxu1  ;;  %v253_v61 = vmax.f32 %v209_v47, 0.0  ;;  %v261_v62 = vmax.f32 %v241_v48, 0.0 }
 0x101   :  { %v204_v59 = vadd.f32 %v347_v16, %v203_v57  ;;  %v236_v60 = vadd.f32 %v347_v16, %v235_v58  ;;  %v251_v1 = vmax.f32 %v201_v51, 0.0  ;;  %v259_v2 = vmax.f32 %v233_v52, 0.0 }
 0x102   :  { %v254_v63 = vmax.f32 %v212_v55, 0.0  ;;  %v262_v0 = vmax.f32 %v244_v56, 0.0 }
 0x103   :  { %v252_v3 = vmax.f32 %v204_v59, 0.0  ;;  %v260_v4 = vmax.f32 %v236_v60, 0.0 }
 0x104   :  { %v414_v5 = vpack.c.bf16 %v254_v63, %v253_v61  ;;  %v434_v6 = vpack.c.bf16 %v262_v0, %v261_v62 }
 0x105   :  { %v409_v7 = vpack.c.bf16 %v252_v3, %v251_v1  ;;  %v429_v8 = vpack.c.bf16 %v260_v4, %v259_v2 }
 0x106   :  { %438 = vst [vmem:[%s621_s3 + $0x18] sm:$0xff] %v414_v5   ;;  %442 = vst [vmem:[%s621_s3 + $0x38] sm:$0xff] %v434_v6  }
 0x107   :  { %437 = vst [vmem:[%s621_s3 + $0x10] sm:$0xff] %v409_v7   ;;  %441 = vst [vmem:[%s621_s3 + $0x30] sm:$0xff] %v429_v8  }

// kernel: basic_block_forward_nhwc.3
= control target key start
LH: loop header
LB: loop body
LE: loop exit
PB: predicated region body
PF: predicated region fallthrough
CT: control target
= control target key end

     0   :  { %13 = vsyncpa [#allocation3], 0  ;;  %s1217_s0 = inlined_call_operand.vmem [shape: bf16[128,128], index: 0, kind: input, shape index: {}]   ;;  %s1218_s1 = inlined_call_operand.vmem [shape: bf16[128,128], index: 1, kind: input, shape index: {}]   ;;  %s1219_s2 = inlined_call_operand.vmem [shape: f32[1,128], index: 2, kind: input, shape index: {}]   ;;  %s1220_s3 = inlined_call_operand.vmem [shape: bf16[128,128], index: 3, kind: input, shape index: {}]   ;;  %s1221_s4 = inlined_call_operand.vmem [shape: bf16[128,128], index: 4, kind: input, shape index: {}]   ;;  %s1222_s5 = inlined_call_operand.vmem [shape: f32[1,128], index: 5, kind: input, shape index: {}]   ;;  %s1223_s6 = inlined_call_operand.hbm [shape: f32[128,128], index: 6, kind: output, shape index: {0}]   ;;  %s1224_s7 = inlined_call_operand.hbm [shape: bf16[128,128], index: 7, kind: output, shape index: {1}]  }
   0x1   :  { %v915_v0 = vld [vmem:[%s1218_s1] sm:$0xff]   ;;  %v917_v2 = vld [vmem:[%s1218_s1 + $0x8] sm:$0xff]   ;;  %v919_v4 = vld [vmem:[%s1218_s1 + $0x10] sm:$0xff]  }
   0x2   :  { %v916_v1 = vld [vmem:[%s1221_s4] sm:$0xff]   ;;  %797 = vmatprep.subr.bf16.mxu1 %v915_v0  ;;  %v918_v3 = vld [vmem:[%s1221_s4 + $0x8] sm:$0xff]   ;;  %v920_v5 = vld [vmem:[%s1221_s4 + $0x10] sm:$0xff]  }
   0x3   :  { %798 = vmatpush3.bf16.msra.mxu1 %v915_v0  ;;  %829 = vmatprep.subr.bf16.mxu0 %v916_v1  ;;  %v921_v6 = vld [vmem:[%s1218_s1 + $0x18] sm:$0xff]   ;;  %v923_v8 = vld [vmem:[%s1218_s1 + $0x20] sm:$0xff]   ;;  %v925_v10 = vld [vmem:[%s1218_s1 + $0x28] sm:$0xff]  }
   0x4   :  { %830 = vmatpush3.bf16.msra.mxu0 %v916_v1  ;;  %799 = vmatprep.subr.bf16.mxu1 %v917_v2  ;;  %v922_v7 = vld [vmem:[%s1221_s4 + $0x18] sm:$0xff]   ;;  %v924_v9 = vld [vmem:[%s1221_s4 + $0x20] sm:$0xff]   ;;  %v926_v12 = vld [vmem:[%s1221_s4 + $0x28] sm:$0xff]  }
   0x5   :  { %831 = vmatprep.subr.bf16.mxu0 %v918_v3  ;;  %v931_v11 = vld [vmem:[%s1217_s0] sm:$0xff]   ;;  %v927_v14 = vld [vmem:[%s1218_s1 + $0x30] sm:$0xff]   ;;  %v929_v16 = vld [vmem:[%s1218_s1 + $0x38] sm:$0xff]  }
   0x6   :  { %813 = vmatprep.mubr.bf16.mxu1 %v931_v11  ;;  %v933_v13 = vld [vmem:[%s1220_s3] sm:$0xff]   ;;  %v928_v15 = vld [vmem:[%s1221_s4 + $0x30] sm:$0xff]   ;;  %v930_v17 = vld [vmem:[%s1221_s4 + $0x38] sm:$0xff]  }
   0x7   :  { %800 = vmatpush3.bf16.msra.mxu1 %v917_v2  ;;  %845 = vmatprep.mubr.bf16.mxu0 %v933_v13  ;;  %v932_v18 = vld [vmem:[%s1217_s0 + $0x8] sm:$0xff]   ;;  %v935_v20 = vld [vmem:[%s1217_s0 + $0x10] sm:$0xff]  }
   0x8   :  { %832 = vmatpush3.bf16.msra.mxu0 %v918_v3  ;;  %801 = vmatprep.subr.bf16.mxu1 %v919_v4  ;;  %v934_v19 = vld [vmem:[%s1220_s3 + $0x8] sm:$0xff]   ;;  %v937_v21 = vld [vmem:[%s1220_s3 + $0x10] sm:$0xff]  }
   0x9   :  { %833 = vmatprep.subr.bf16.mxu0 %v920_v5 }
   0xb   :  { %802 = vmatpush3.bf16.msra.mxu1 %v919_v4 }
   0xc   :  { %834 = vmatpush3.bf16.msra.mxu0 %v920_v5  ;;  %803 = vmatprep.subr.bf16.mxu1 %v921_v6 }
   0xd   :  { %835 = vmatprep.subr.bf16.mxu0 %v922_v7 }
   0xf   :  { %804 = vmatpush3.bf16.msra.mxu1 %v921_v6 }
  0x10   :  { %836 = vmatpush3.bf16.msra.mxu0 %v922_v7  ;;  %805 = vmatprep.subr.bf16.mxu1 %v923_v8 }
  0x11   :  { %837 = vmatprep.subr.bf16.mxu0 %v924_v9 }
  0x13   :  { %806 = vmatpush3.bf16.msra.mxu1 %v923_v8 }
  0x14   :  { %838 = vmatpush3.bf16.msra.mxu0 %v924_v9  ;;  %807 = vmatprep.subr.bf16.mxu1 %v925_v10 }
  0x15   :  { %839 = vmatprep.subr.bf16.mxu0 %v926_v12 }
  0x17   :  { %808 = vmatpush3.bf16.msra.mxu1 %v925_v10 }
  0x18   :  { %840 = vmatpush3.bf16.msra.mxu0 %v926_v12  ;;  %809 = vmatprep.subr.bf16.mxu1 %v927_v14 }
  0x19   :  { %841 = vmatprep.subr.bf16.mxu0 %v928_v15 }
  0x1b   :  { %810 = vmatpush3.bf16.msra.mxu1 %v927_v14 }
  0x1c   :  { %842 = vmatpush3.bf16.msra.mxu0 %v928_v15  ;;  %811 = vmatprep.subr.bf16.mxu1 %v929_v16 }
  0x1d   :  { %843 = vmatprep.subr.bf16.mxu0 %v930_v17 }
  0x1f   :  { %812 = vmatpush3.bf16.msra.mxu1 %v929_v16 }
  0x20   :  { %844 = vmatpush3.bf16.msra.mxu0 %v930_v17 }
  0x21   :  { %14 = vsyncpa [#allocation5], 0  ;;  %v936_v22 = vld [vmem:[%s1217_s0 + $0x18] sm:$0xff]   ;;  %v939_v24 = vld [vmem:[%s1217_s0 + $0x20] sm:$0xff]  }
  0x22   :  { %814 = vmatmul.mubr.bf16.vlgmr.msra.gmra.mrb[0].mxu1 %v932_v18  ;;  %v938_v23 = vld [vmem:[%s1220_s3 + $0x18] sm:$0xff]   ;;  %v941_v25 = vld [vmem:[%s1220_s3 + $0x20] sm:$0xff]   ;;  %v940_v26 = vld [vmem:[%s1217_s0 + $0x28] sm:$0xff]  }
  0x23   :  { %846 = vmatmul.mubr.bf16.vlgmr.msra.gmra.mrb[0].mxu0 %v934_v19  ;;  %817 = vmatprep.mubr.bf16.mxu1 %v935_v20  ;;  %v942_v27 = vld [vmem:[%s1220_s3 + $0x28] sm:$0xff]   ;;  %v943_v28 = vld [vmem:[%s1217_s0 + $0x30] sm:$0xff]   ;;  %v944_v30 = vld [vmem:[%s1217_s0 + $0x38] sm:$0xff]  }
  0x24   :  { %849 = vmatprep.mubr.bf16.mxu0 %v937_v21  ;;  %v945_v29 = vld [vmem:[%s1220_s3 + $0x30] sm:$0xff]   ;;  %v946_v31 = vld [vmem:[%s1220_s3 + $0x38] sm:$0xff]   ;;  %v1140_v32 = vld [vmem:[%s1219_s2] ss:$0 sm:$0xff]  ;;  %s995_s2 = smov [#allocation2]  }
  0x25   :  { %v1147_v38 = vld [vmem:[%s1222_s5] ss:$0 sm:$0xff]  ;;  %s625_s3 = sshll.u32 %s995_s2, 4  ;;  %s996_s5 = smov [#allocation4]   ;;  %s1179_s3 = int_to_ptr.vmem [resolvable:$true] %s625_s3 }
  0x26   :  { %s637_s19 = sshll.u32 %s996_s5, 4  ;;  %s947_s4 = scalar_lea.vmem %s1179_s3, 2048  ;;  %s1181_s19 = int_to_ptr.vmem [resolvable:$true] %s637_s19 }
  0x27   :  { %p948_p0 = scmp.ne.s32.totalorder %s1179_s3, %s947_s4  ;;  %p952_p1 = scmp.lt.s32.totalorder %s1179_s3, %s1179_s3 }
  0x28   :  { %p953_p2 = scmp.lt.s32.totalorder %s947_s4, %s947_s4 }
  0x2a   :  { %818 = vmatmul.mubr.bf16.gmra.mrb[4].mxu1 %v936_v22  ;;  %p954_p3 = por %p953_p2, %p952_p1 }
  0x2b   :  { %850 = vmatmul.mubr.bf16.gmra.mrb[4].mxu0 %v938_v23  ;;  %821 = vmatprep.mubr.bf16.mxu1 %v939_v24 }
  0x2c   :  { %853 = vmatprep.mubr.bf16.mxu0 %v941_v25  ;;  %p955_p4 = pnand %p954_p3, %p948_p0 }
  0x32   :  { %822 = vmatmul.mubr.bf16.gmra.mrb[8].mxu1 %v940_v26 }
  0x33   :  { %854 = vmatmul.mubr.bf16.gmra.mrb[8].mxu0 %v942_v27  ;;  %825 = vmatprep.mubr.bf16.mxu1 %v943_v28 }
  0x34   :  { %857 = vmatprep.mubr.bf16.mxu0 %v945_v29 }
  0x3a   :  { %826 = vmatmul.mubr.bf16.gmra.mrb[12].mxu1 %v944_v30 }
  0x3b   :  { %858 = vmatmul.mubr.bf16.gmra.mrb[12].mxu0 %v946_v31 }
  0xf5   :  { %v815_v33 = vpop.f32.mrb[0].mxu1 }
  0xf6   :  { %v206_v34 = vadd.f32 %v815_v33, %v1140_v32  ;;  %v197_v35 = vpop.f32.mrb[1].mxu1  ;;  %v847_v36 = vpop.f32.mrb[0].mxu0 }
  0xf7   :  { %v198_v37 = vadd.f32 %v1140_v32, %v197_v35  ;;  %v816_v39 = vpop.f32.mrb[2].mxu1  ;;  %v429_v40 = vpop.f32.mrb[1].mxu0 }
  0xf8   :  { %v862_v41 = vadd.f32 %v847_v36, %v206_v34  ;;  %v209_v42 = vadd.f32 %v816_v39, %v1140_v32  ;;  %v200_v43 = vpop.f32.mrb[3].mxu1  ;;  %v848_v44 = vpop.f32.mrb[2].mxu0 }
  0xf9   :  { %v865_v45 = vadd.f32 %v429_v40, %v198_v37  ;;  %v201_v46 = vadd.f32 %v1140_v32, %v200_v43  ;;  %v432_v47 = vpop.f32.mrb[3].mxu0 }
  0xfa   :  { %v863_v48 = vadd.f32 %v862_v41, %v1147_v38  ;;  %v868_v49 = vadd.f32 %v1147_v38, %v209_v42 }
  0xfb   :  { %v866_v50 = vadd.f32 %v865_v45, %v1147_v38  ;;  %v871_v51 = vadd.f32 %v1147_v38, %v201_v46 }
  0xfc   :  { %526 = vst [vmem:[#allocation2 + $0x10] sm:$0xff] %v863_v48  ;;  %v869_v52 = vadd.f32 %v868_v49, %v848_v44  ;;  %v510_v55 = vmax.f32 %v863_v48, 0.0 }
  0xfd   :  { %524 = vst [vmem:[#allocation2] sm:$0xff] %v866_v50  ;;  %v872_v53 = vadd.f32 %v871_v51, %v432_v47  ;;  %v819_v54 = vpop.f32.mrb[4].mxu1  ;;  %v508_v60 = vmax.f32 %v866_v50, 0.0 }
  0xfe   :  { %v511_v56 = vmax.f32 %v869_v52, 0.0  ;;  %527 = vst [vmem:[#allocation2 + $0x18] sm:$0xff] %v869_v52  ;;  %v222_v57 = vadd.f32 %v819_v54, %v1140_v32  ;;  %v213_v58 = vpop.f32.mrb[5].mxu1  ;;  %v851_v59 = vpop.f32.mrb[4].mxu0 }
  0xff   :  { %v509_v61 = vmax.f32 %v872_v53, 0.0  ;;  %525 = vst [vmem:[#allocation2 + $0x8] sm:$0xff] %v872_v53  ;;  %v214_v62 = vadd.f32 %v1140_v32, %v213_v58  ;;  %v820_v63 = vpop.f32.mrb[6].mxu1  ;;  %v445_v0 = vpop.f32.mrb[5].mxu0 }
 0x100   :  { %v726_v1 = vpack.c.bf16 %v511_v56, %v510_v55  ;;  %v874_v2 = vadd.f32 %v1147_v38, %v222_v57  ;;  %v225_v3 = vadd.f32 %v820_v63, %v1140_v32  ;;  %v216_v4 = vpop.f32.mrb[7].mxu1  ;;  %v852_v5 = vpop.f32.mrb[6].mxu0 }
 0x101   :  { %v721_v6 = vpack.c.bf16 %v509_v61, %v508_v60  ;;  %v877_v7 = vadd.f32 %v1147_v38, %v214_v62  ;;  %v217_v8 = vadd.f32 %v1140_v32, %v216_v4  ;;  %v448_v9 = vpop.f32.mrb[7].mxu0 }
 0x102   :  { %758 = vst [vmem:[#allocation4 + $0x8] sm:$0xff] %v726_v1   ;;  %v875_v10 = vadd.f32 %v874_v2, %v851_v59  ;;  %v880_v11 = vadd.f32 %v1147_v38, %v225_v3 }
 0x103   :  { %722 = vst [vmem:[#allocation4] sm:$0xff] %v721_v6   ;;  %v878_v12 = vadd.f32 %v877_v7, %v445_v0  ;;  %v883_v13 = vadd.f32 %v1147_v38, %v217_v8 }
 0x104   :  { %530 = vst [vmem:[#allocation2 + $0x30] sm:$0xff] %v875_v10  ;;  %v881_v14 = vadd.f32 %v880_v11, %v852_v5  ;;  %v514_v17 = vmax.f32 %v875_v10, 0.0 }
 0x105   :  { %528 = vst [vmem:[#allocation2 + $0x20] sm:$0xff] %v878_v12  ;;  %v884_v15 = vadd.f32 %v883_v13, %v448_v9  ;;  %v823_v16 = vpop.f32.mrb[8].mxu1  ;;  %v512_v22 = vmax.f32 %v878_v12, 0.0 }
 0x106   :  { %v515_v18 = vmax.f32 %v881_v14, 0.0  ;;  %531 = vst [vmem:[#allocation2 + $0x38] sm:$0xff] %v881_v14  ;;  %v238_v19 = vadd.f32 %v823_v16, %v1140_v32  ;;  %v229_v20 = vpop.f32.mrb[9].mxu1  ;;  %v855_v21 = vpop.f32.mrb[8].mxu0 }
 0x107   :  { %v513_v23 = vmax.f32 %v884_v15, 0.0  ;;  %529 = vst [vmem:[#allocation2 + $0x28] sm:$0xff] %v884_v15  ;;  %v230_v24 = vadd.f32 %v1140_v32, %v229_v20  ;;  %v824_v25 = vpop.f32.mrb[10].mxu1  ;;  %v461_v26 = vpop.f32.mrb[9].mxu0 }
 0x108   :  { %v736_v27 = vpack.c.bf16 %v515_v18, %v514_v17  ;;  %v886_v28 = vadd.f32 %v1147_v38, %v238_v19  ;;  %v241_v29 = vadd.f32 %v824_v25, %v1140_v32  ;;  %v232_v30 = vpop.f32.mrb[11].mxu1  ;;  %v856_v31 = vpop.f32.mrb[10].mxu0 }
 0x109   :  { %v731_v33 = vpack.c.bf16 %v513_v23, %v512_v22  ;;  %v889_v34 = vadd.f32 %v1147_v38, %v230_v24  ;;  %v233_v35 = vadd.f32 %v1140_v32, %v232_v30  ;;  %v464_v36 = vpop.f32.mrb[11].mxu0 }
 0x10a   :  { %760 = vst [vmem:[#allocation4 + $0x18] sm:$0xff] %v736_v27   ;;  %v887_v37 = vadd.f32 %v886_v28, %v855_v21  ;;  %v892_v39 = vadd.f32 %v1147_v38, %v241_v29 }
 0x10b   :  { %759 = vst [vmem:[#allocation4 + $0x10] sm:$0xff] %v731_v33   ;;  %v890_v40 = vadd.f32 %v889_v34, %v461_v26  ;;  %v895_v41 = vadd.f32 %v1147_v38, %v233_v35 }
 0x10c   :  { %534 = vst [vmem:[#allocation2 + $0x50] sm:$0xff] %v887_v37  ;;  %v893_v42 = vadd.f32 %v892_v39, %v856_v31  ;;  %v518_v45 = vmax.f32 %v887_v37, 0.0 }
 0x10d   :  { %532 = vst [vmem:[#allocation2 + $0x40] sm:$0xff] %v890_v40  ;;  %v896_v43 = vadd.f32 %v895_v41, %v464_v36  ;;  %v827_v44 = vpop.f32.mrb[12].mxu1  ;;  %v516_v50 = vmax.f32 %v890_v40, 0.0 }
 0x10e   :  { %v519_v46 = vmax.f32 %v893_v42, 0.0  ;;  %535 = vst [vmem:[#allocation2 + $0x58] sm:$0xff] %v893_v42  ;;  %v254_v47 = vadd.f32 %v827_v44, %v1140_v32  ;;  %v245_v48 = vpop.f32.mrb[13].mxu1  ;;  %v859_v49 = vpop.f32.mrb[12].mxu0 }
 0x10f   :  { %v517_v51 = vmax.f32 %v896_v43, 0.0  ;;  %533 = vst [vmem:[#allocation2 + $0x48] sm:$0xff] %v896_v43  ;;  %v246_v52 = vadd.f32 %v1140_v32, %v245_v48  ;;  %v828_v53 = vpop.f32.mrb[14].mxu1  ;;  %v477_v54 = vpop.f32.mrb[13].mxu0 }
 0x110   :  { %v746_v55 = vpack.c.bf16 %v519_v46, %v518_v45  ;;  %v898_v56 = vadd.f32 %v1147_v38, %v254_v47  ;;  %v257_v57 = vadd.f32 %v828_v53, %v1140_v32  ;;  %v248_v58 = vpop.f32.mrb[15].mxu1  ;;  %v860_v59 = vpop.f32.mrb[14].mxu0 }
 0x111   :  { %v741_v60 = vpack.c.bf16 %v517_v51, %v516_v50  ;;  %v901_v61 = vadd.f32 %v1147_v38, %v246_v52  ;;  %v249_v62 = vadd.f32 %v1140_v32, %v248_v58  ;;  %v480_v63 = vpop.f32.mrb[15].mxu0 }
 0x112   :  { %762 = vst [vmem:[#allocation4 + $0x28] sm:$0xff] %v746_v55   ;;  %v899_v0 = vadd.f32 %v898_v56, %v859_v49  ;;  %v904_v1 = vadd.f32 %v1147_v38, %v257_v57 }
 0x113   :  { %761 = vst [vmem:[#allocation4 + $0x20] sm:$0xff] %v741_v60   ;;  %v902_v2 = vadd.f32 %v901_v61, %v477_v54  ;;  %v907_v3 = vadd.f32 %v1147_v38, %v249_v62 }
 0x114   :  { %538 = vst [vmem:[#allocation2 + $0x70] sm:$0xff] %v899_v0  ;;  %v905_v4 = vadd.f32 %v904_v1, %v860_v59  ;;  %v522_v5 = vmax.f32 %v899_v0, 0.0 }
 0x115   :  { %536 = vst [vmem:[#allocation2 + $0x60] sm:$0xff] %v902_v2  ;;  %v908_v32 = vadd.f32 %v907_v3, %v480_v63  ;;  %v520_v7 = vmax.f32 %v902_v2, 0.0 }
 0x116   :  { %v523_v6 = vmax.f32 %v905_v4, 0.0  ;;  %539 = vst [vmem:[#allocation2 + $0x78] sm:$0xff] %v905_v4 }
 0x117   :  { %v521_v8 = vmax.f32 %v908_v32, 0.0  ;;  %537 = vst [vmem:[#allocation2 + $0x68] sm:$0xff] %v908_v32 }
 0x118   :  { %v756_v38 = vpack.c.bf16 %v523_v6, %v522_v5 }
 0x119   :  { %958 = shalt.err (!%p955_p4)
}
 0x11a   :  { %s959_s22 = scalar_lea.hbm %s1223_s6, 2048 }
 0x11b   :  { %p960_p5 = scmp.ne.s32.totalorder %s1223_s6, %s959_s22  ;;  %p963_p6 = scmp.lt.u32.totalorder %s959_s22, %s1223_s6 }
 0x11d   :  { %p965_p7 = pnand %p963_p6, %p960_p5 }
 0x11f   :  { %968 = shalt.err (!%p965_p7)
}
 0x120   :  { %s997_s27 = smov 128   ;;  %s998_s28 = smov 8   ;;  %v751_v9 = vpack.c.bf16 %v521_v8, %v520_v7  ;;  %764 = vst [vmem:[#allocation4 + $0x38] sm:$0xff] %v756_v38  }
 0x121   :  { %631 = dma.vmem_to_hbm [thread:$0]  %s1179_s3, 2048, %s1223_s6, [#allocation3], %s997_s27, %s997_s27, %s998_s28  }
 0x122   :  { %763 = vst [vmem:[#allocation4 + $0x30] sm:$0xff] %v751_v9   ;;  %s969_s8 = scalar_lea.vmem %s1181_s19, 1024  ;;  %p974_p9 = scmp.lt.s32.totalorder %s1181_s19, %s1181_s19 }
 0x123   :  { %p970_p8 = scmp.ne.s32.totalorder %s1181_s19, %s969_s8  ;;  %p975_p10 = scmp.lt.s32.totalorder %s969_s8, %s969_s8 }
 0x125   :  { %p976_p11 = por %p975_p10, %p974_p9 }
 0x127   :  { %p977_p12 = pnand %p976_p11, %p970_p8 }
 0x129   :  { %980 = shalt.err (!%p977_p12)
}
 0x12a   :  { %s981_s11 = scalar_lea.hbm %s1224_s7, 1024 }
 0x12b   :  { %p982_p13 = scmp.ne.s32.totalorder %s1224_s7, %s981_s11  ;;  %p985_p0 = scmp.lt.u32.totalorder %s981_s11, %s1224_s7 }
 0x12d   :  { %p987_p1 = pnand %p985_p0, %p982_p13 }
 0x12f   :  { %990 = shalt.err (!%p987_p1)
}
 0x130   :  { %s999_s15 = smov 64   ;;  %s1000_s16 = smov 4  }
 0x131   :  { %643 = dma.vmem_to_hbm [thread:$0]  %s1181_s19, 1024, %s1224_s7, [#allocation5], %s999_s15, %s999_s15, %s1000_s16  }
 0x132   :  { %991 = dma.done.wait [#allocation3], 2048  }
 0x133   :  { %992 = vsyncadd [#allocation3], 4294965248 }
 0x134   :  { %993 = dma.done.wait [#allocation5], 1024  }
 0x135   :  { %994 = vsyncadd [#allocation5], 4294966272 }
 0x136   :  { %650 = vsyncpa [#allocation3], 1 }
 0x137   :  { %651 = vsyncpa [#allocation5], 1 }

</bundles_post_ra>
